<compile_context>
chip_gen: v6e
topology: v6e:2x2x1
jax: 0.10.0
libtpu: 0.0.40
codegen_flags: <defaults>
</compile_context>

<pallas_src>
import jax
import jax.numpy as jnp
from jax.experimental import pallas as pl
from jax.experimental.pallas import tpu as pltpu


def generate_spatial_batch(H, W):
    """JAX port of the module's generate_spatial_batch -> (1, H, W, 8)."""
    w = jnp.arange(W, dtype=jnp.float32)
    h = jnp.arange(H, dtype=jnp.float32)
    xmin = w / W * 2.0 - 1.0
    xmax = (w + 1.0) / W * 2.0 - 1.0
    xctr = (xmin + xmax) / 2.0
    ymin = h / H * 2.0 - 1.0
    ymax = (h + 1.0) / H * 2.0 - 1.0
    yctr = (ymin + ymax) / 2.0
    feats = [
        jnp.broadcast_to(xmin[None, :], (H, W)),
        jnp.broadcast_to(ymin[:, None], (H, W)),
        jnp.broadcast_to(xmax[None, :], (H, W)),
        jnp.broadcast_to(ymax[:, None], (H, W)),
        jnp.broadcast_to(xctr[None, :], (H, W)),
        jnp.broadcast_to(yctr[:, None], (H, W)),
        jnp.full((H, W), 1.0 / W, jnp.float32),
        jnp.full((H, W), 1.0 / H, jnp.float32),
    ]
    return jnp.stack(feats, axis=-1)[None]  # (1, H, W, 8)


def attention_co_kernel(p_ref, cimg_ref, node_ref, w_img_ref, w_proj_ref,
                        co_ref, acc_ref):
    """One (batch, query-tile) step of the attention / co-context stage.

    p_ref    : (1, tq, C)  bf16  p_fea rows for this query tile
    cimg_ref : (tq, C)     f32   coord @ w_img_coord additive term (BN folded)
    node_ref : (1, Hd, L)  bf16  node_conv output, channel-major (keys)
    w_img    : (C, C)      bf16  img_conv weight (BN folded)
    w_proj   : (C, Hd)     bf16  W projection
    co_ref   : (1, C, L)   bf16  output: co-context, channel-major
    acc_ref  : (C, L)      f32   VMEM accumulator over query tiles
    """
    qi = pl.program_id(1)

    @pl.when(qi == 0)
    def _init():
        acc_ref[...] = jnp.zeros_like(acc_ref)

    p_t = p_ref[0]                                            # (tq, C) bf16
    # img_conv (weights pre-folded with BN, coord term additive) + ReLU.
    query = jnp.maximum(
        jnp.dot(p_t, w_img_ref[...], preferred_element_type=jnp.float32)
        + cimg_ref[...], 0.0)                                 # (tq, C) f32
    proj1 = jnp.dot(query.astype(jnp.bfloat16), w_proj_ref[...],
                    preferred_element_type=jnp.float32)       # (tq, Hd) f32
    # energy: MXU-native (tq, Hd) @ (Hd, L) -- node already channel-major.
    energy = jnp.dot(proj1.astype(jnp.bfloat16), node_ref[0],
                     preferred_element_type=jnp.float32)      # (tq, L) f32

    # Exact row softmax (full key axis is present in the tile); denominator
    # folded into the small (tq, C) p rows instead of the (tq, L) matrix.
    e_max = jnp.max(energy, axis=-1, keepdims=True)
    e_exp = jnp.exp(energy - e_max)                           # (tq, L) f32
    denom = jnp.sum(e_exp, axis=-1, keepdims=True)            # (tq, 1)
    inv = pl.reciprocal(denom, approx=True)                   # EUP slot
    p_scaled = (p_t.astype(jnp.float32) * inv).astype(jnp.bfloat16)  # (tq, C)

    # co(C, L) += p_scaled^T @ e_exp.  Channel-major accumulator: only the
    # small (tq, C) operand is in a non-native orientation; the (tq, L) and
    # (C, L) tiles never get transposed.
    acc_ref[...] += jax.lax.dot_general(
        p_scaled, e_exp.astype(jnp.bfloat16),
        (((0,), (0,)), ((), ())),
        preferred_element_type=jnp.float32)                   # (C, L) f32

    @pl.when(qi == pl.num_programs(1) - 1)
    def _finalize():
        co_ref[0] = acc_ref[...].astype(co_ref.dtype)


def project_kernel(co_ref, p_ref, w1a_ref, w1b_ref, w2_ref, alpha_ref, out_ref):
    """alpha-blend + project convs for one (batch, L-tile); channel-major.

    co_ref  : (1, C, tl)   bf16  attention co-context tile
    p_ref   : (1, C, tl)   f32   p_fea tile (residual)
    w1a/w1b : (C, C)       bf16  project conv1 weight^T, split (co / p halves)
    w2      : (2Hd, C)     bf16  project conv2 weight^T
    alpha   : (1,)  SMEM   f32
    out_ref : (1, 2Hd, tl) f32   lane-dense channel-major output tile
    """
    p_cm = p_ref[0]                                            # (C, tl) f32
    blend = alpha_ref[0] * co_ref[0].astype(jnp.float32) + p_cm
    h1 = jnp.maximum(
        jnp.dot(w1a_ref[...], blend.astype(jnp.bfloat16),
                preferred_element_type=jnp.float32)
        + jnp.dot(w1b_ref[...], p_cm.astype(jnp.bfloat16),
                  preferred_element_type=jnp.float32),
        0.0)                                                   # (C, tl) f32
    out = jnp.dot(w2_ref[...], h1.astype(jnp.bfloat16),
                  preferred_element_type=jnp.float32)          # (2Hd, tl)
    out_ref[0] = jnp.maximum(out, 0.0)


def dep_context_pallas(p_fea, hu, params, *, tq=None, tl=None):
    n, C, H, W_ = p_fea.shape
    Hd = hu.shape[1]
    L = H * W_
    s = params["bn_scale"]

    # ---- tiling ----
    if tq is None:
        tq = min(256, L)
    tq = min(tq, L)
    tq = ((tq + 7) // 8) * 8              # sublane-aligned query tile
    n_qt = pl.cdiv(L, tq)
    Lq = n_qt * tq

    if tl is None:
        tl = L if L <= 2048 else 512
    tl = min(tl, L)
    if tl != L:
        tl = max(128, (tl // 128) * 128)  # lane-aligned L tiles
    n_lt = pl.cdiv(L, tl)

    # ---- BN folding (inference-mode identity stats) + weight prep (bf16) ----
    w_img_p = (params["w_img"][:C] * s).astype(jnp.bfloat16)       # (C, C)
    w_img_c = params["w_img"][C:] * s                              # (8, C) f32
    w_node_p = params["w_node"][:Hd] * s                           # (Hd, Hd)
    w_node_c = params["w_node"][Hd:] * s                           # (8, Hd)
    w_proj = params["W"].astype(jnp.bfloat16)                      # (C, Hd)
    w1a_t = (params["w_p1"][:C] * s).T.astype(jnp.bfloat16)        # (C, C)
    w1b_t = (params["w_p1"][C:] * s).T.astype(jnp.bfloat16)        # (C, C)
    w2_t = (params["w_p2"] * s).T.astype(jnp.bfloat16)             # (2Hd, C)
    alpha = params["alpha"].reshape(1).astype(jnp.float32)

    # ---- layout plumbing (plain XLA) ----
    coord = generate_spatial_batch(H, W_).reshape(L, 8)            # (L, 8)
    cimg = jnp.dot(coord, w_img_c)                                 # (L, C) f32
    cnode = jnp.dot(coord, w_node_c)                               # (L, Hd) f32

    p_cl = p_fea.reshape(n, C, L).astype(jnp.float32)              # channel-major (free)
    p_lc = jnp.transpose(p_fea, (0, 2, 3, 1)).reshape(n, L, C)
    hu_lc = jnp.transpose(hu, (0, 2, 3, 1)).reshape(n, L, Hd)

    # node_conv hoisted out of the kernel (removes the serialized q==0 matmul
    # and the resident f32 hu buffer); shipped channel-major in bf16.
    node = jnp.maximum(
        jnp.einsum('nlh,hk->nlk', hu_lc, w_node_p) + cnode[None], 0.0)
    node_cm = jnp.transpose(node, (0, 2, 1)).astype(jnp.bfloat16)  # (n, Hd, L)

    p_lc_b = p_lc.astype(jnp.bfloat16)
    if Lq != L:
        # Zero-padded query rows give zero p_scaled rows -> contribute exactly
        # 0 to the co accumulator (folded BN biases are identically zero).
        p_lc_b = jnp.pad(p_lc_b, ((0, 0), (0, Lq - L), (0, 0)))
        cimg = jnp.pad(cimg, ((0, Lq - L), (0, 0)))

    # ---- kernel A: query-tiled attention / co-context ----
    co = pl.pallas_call(
        attention_co_kernel,
        out_shape=jax.ShapeDtypeStruct((n, C, L), jnp.bfloat16),
        grid=(n, n_qt),
        in_specs=[
            pl.BlockSpec((1, tq, C), lambda b, q: (b, q, 0)),      # p rows (query tile)
            pl.BlockSpec((tq, C), lambda b, q: (q, 0)),            # coord img term
            pl.BlockSpec((1, Hd, L), lambda b, q: (b, 0, 0)),      # node (keys)
            pl.BlockSpec((C, C), lambda b, q: (0, 0)),             # img_conv weight
            pl.BlockSpec((C, Hd), lambda b, q: (0, 0)),            # W projection
        ],
        out_specs=pl.BlockSpec((1, C, L), lambda b, q: (b, 0, 0)),
        scratch_shapes=[pltpu.VMEM((C, L), jnp.float32)],
        compiler_params=pltpu.CompilerParams(
            dimension_semantics=("parallel", "arbitrary"),
            vmem_limit_bytes=48 * 1024 * 1024,
        ),
    )(p_lc_b, cimg, node_cm, w_img_p, w_proj)

    # ---- kernel B: alpha-blend + project convs, tiled over L ----
    out_cl = pl.pallas_call(
        project_kernel,
        out_shape=jax.ShapeDtypeStruct((n, 2 * Hd, L), jnp.float32),
        grid=(n, n_lt),
        in_specs=[
            pl.BlockSpec((1, C, tl), lambda b, l: (b, 0, l)),      # co (bf16)
            pl.BlockSpec((1, C, tl), lambda b, l: (b, 0, l)),      # p (f32 residual)
            pl.BlockSpec((C, C), lambda b, l: (0, 0)),             # conv1 w^T (co half)
            pl.BlockSpec((C, C), lambda b, l: (0, 0)),             # conv1 w^T (p half)
            pl.BlockSpec((2 * Hd, C), lambda b, l: (0, 0)),        # conv2 w^T
            pl.BlockSpec(memory_space=pltpu.MemorySpace.SMEM),     # alpha scalar
        ],
        out_specs=pl.BlockSpec((1, 2 * Hd, tl), lambda b, l: (b, 0, l)),
        compiler_params=pltpu.CompilerParams(
            dimension_semantics=("parallel", "parallel"),
            vmem_limit_bytes=32 * 1024 * 1024,
        ),
    )(co, p_cl, w1a_t, w1b_t, w2_t, alpha)

    # Channel-major kernel output -> NCHW with a plain reshape.
    return out_cl.reshape(n, 2 * Hd, H, W_)


def ref_forward(p_fea, hu, params):
    """Pure-JAX f32 reference mirroring the PyTorch forward (NCHW)."""
    n, C, H, W_ = p_fea.shape
    Hd = hu.shape[1]
    L = H * W_
    s = params["bn_scale"]
    coord = jnp.transpose(
        jnp.tile(generate_spatial_batch(H, W_), (n, 1, 1, 1)), (0, 3, 1, 2))

    def conv_bn_relu(x, w_in_out):
        y = jnp.einsum('io,nihw->nohw', w_in_out, x) * s
        return jnp.maximum(y, 0.0)

    query = conv_bn_relu(jnp.concatenate([p_fea, coord], axis=1), params["w_img"])
    project1 = jnp.einsum('ncl,ch->nlh', query.reshape(n, C, L), params["W"])
    node = conv_bn_relu(jnp.concatenate([hu, coord], axis=1),
                        params["w_node"]).reshape(n, Hd, L)
    energy = jnp.einsum('nlh,nhm->nlm', project1, node)
    attention = jax.nn.softmax(energy, axis=-1)
    co = jnp.einsum('ncl,nlm->ncm', p_fea.reshape(n, C, L), attention).reshape(n, C, H, W_)
    co = params["alpha"][0] * co + p_fea
    out = conv_bn_relu(jnp.concatenate([co, p_fea], axis=1), params["w_p1"])
    out = conv_bn_relu(out, params["w_p2"])
    return out


def init_params(C, Hd, key):
    k1, k2, k3, k4 = jax.random.split(key, 4)
    eps = 1e-5
    bn_scale = jnp.float32(1.0 / jnp.sqrt(1.0 + eps))  # gamma=1, var=1, mean=0, beta=0
    return dict(
        # conv weights stored as (in_channels, out_channels); torch is (out, in, 1, 1)^T
        w_img=jax.random.normal(k1, (C + 8, C), jnp.float32) * 0.05,
        w_node=jax.random.normal(k2, (Hd + 8, Hd), jnp.float32) * 0.05,
        w_p1=jax.random.normal(k3, (2 * C, C), jnp.float32) * 0.05,
        w_p2=jax.random.normal(k4, (C, 2 * Hd), jnp.float32) * 0.05,
        W=jnp.ones((C, Hd), jnp.float32),       # nn.Parameter(torch.ones(in_dim, hidden))
        alpha=jnp.ones((1,), jnp.float32),      # nn.Parameter(torch.ones(1))
        bn_scale=bn_scale,
    )


if __name__ == "__main__":
    key = jax.random.PRNGKey(0)

    # Test 1: 16x16 map (L=256), tq=64 -> 4 query tiles per batch element.
    n, C, Hd, H, W_ = 2, 32, 8, 16, 16
    kp, kh, kparam, key = jax.random.split(key, 4)
    p_fea = jax.random.normal(kp, (n, C, H, W_), jnp.float32)
    hu = jax.random.normal(kh, (n, Hd, H, W_), jnp.float32)
    params = init_params(C, Hd, kparam)

    out = jax.block_until_ready(dep_context_pallas(p_fea, hu, params, tq=64))
    assert out.shape == (n, 2 * Hd, H, W_), out.shape
    ref = jax.block_until_ready(ref_forward(p_fea, hu, params))
    err = float(jnp.max(jnp.abs(out - ref)))
    assert err < 5e-2, err

    # Test 2: 12x12 map (L=144, not a multiple of tq) exercises the zero-padded
    # query-tile path and n=1.
    n2, H2, W2 = 1, 12, 12
    kp2, kh2, kparam2, key = jax.random.split(key, 4)
    p_fea2 = jax.random.normal(kp2, (n2, C, H2, W2), jnp.float32)
    hu2 = jax.random.normal(kh2, (n2, Hd, H2, W2), jnp.float32)
    params2 = init_params(C, Hd, kparam2)

    out2 = jax.block_until_ready(dep_context_pallas(p_fea2, hu2, params2, tq=64))
    assert out2.shape == (n2, 2 * Hd, H2, W2), out2.shape
    ref2 = jax.block_until_ready(ref_forward(p_fea2, hu2, params2))
    err2 = float(jnp.max(jnp.abs(out2 - ref2)))
    assert err2 < 5e-2, err2

    print("KERNEL_OK")
</pallas_src>

<mosaic_0001>
module attributes {stable_mosaic.version = 11 : i64} {
  func.func @attention_co_kernel(%arg0: i32, %arg1: i32, %arg2: memref<1x64x32xbf16, #tpu.memory_space<vmem>>, %arg3: memref<64x32xf32, #tpu.memory_space<vmem>>, %arg4: memref<1x8x256xbf16, #tpu.memory_space<vmem>>, %arg5: memref<32x32xbf16, #tpu.memory_space<vmem>>, %arg6: memref<32x8xbf16, #tpu.memory_space<vmem>>, %arg7: memref<1x32x256xbf16, #tpu.memory_space<vmem>>, %arg8: memref<32x256xf32, #tpu.memory_space<vmem>>) attributes {dimension_semantics = [#tpu.dimension_semantics<parallel>, #tpu.dimension_semantics<arbitrary>], iteration_bounds = array<i64: 2, 4>, scalar_prefetch = 0 : i64, scratch_operands = 1 : i64, tpu.core_type = #tpu.core_type<tc>, window_params = [{transform_indices = @transform_0, window_bounds = array<i64: 1, 64, 32>}, {transform_indices = @transform_1, window_bounds = array<i64: 64, 32>}, {transform_indices = @transform_2, window_bounds = array<i64: 1, 8, 256>}, {pipeline_mode = #tpu.pipeline_mode<synchronous>, transform_indices = @transform_3, window_bounds = array<i64: 32, 32>}, {pipeline_mode = #tpu.pipeline_mode<synchronous>, transform_indices = @transform_4, window_bounds = array<i64: 32, 8>}, {transform_indices = @transform_5, window_bounds = array<i64: 1, 32, 256>}]} {
    %c0_i32 = arith.constant 0 : i32
    %0 = arith.cmpi eq, %arg1, %c0_i32 : i32
    %1 = arith.extui %0 : i1 to i32
    %c0_i32_0 = arith.constant 0 : i32
    %2 = arith.cmpi ne, %1, %c0_i32_0 : i32
    scf.if %2 {
      %cst_23 = arith.constant 0.000000e+00 : f32
      %38 = vector.broadcast %cst_23 : f32 to vector<32x256xf32>
      %c0_24 = arith.constant 0 : index
      %c0_25 = arith.constant 0 : index
      %39 = vector.load %arg8[%c0_24, %c0_25] : memref<32x256xf32, #tpu.memory_space<vmem>>, vector<32x256xf32>
      tpu.vector_store %arg8[%c0_24, %c0_25], %38 {strides = array<i32>} : memref<32x256xf32, #tpu.memory_space<vmem>>, vector<32x256xf32>,
    } else {
    }
    %c0 = arith.constant 0 : index
    %c0_1 = arith.constant 0 : index
    %c0_2 = arith.constant 0 : index
    %3 = vector.load %arg2[%c0, %c0_1, %c0_2] : memref<1x64x32xbf16, #tpu.memory_space<vmem>>, vector<1x64x32xbf16>
    %4 = vector.shape_cast %3 : vector<1x64x32xbf16> to vector<64x32xbf16>
    %c0_3 = arith.constant 0 : index
    %c0_4 = arith.constant 0 : index
    %5 = vector.load %arg5[%c0_3, %c0_4] : memref<32x32xbf16, #tpu.memory_space<vmem>>, vector<32x32xbf16>
    %cst = arith.constant dense<0.000000e+00> : vector<64x32xf32>
    %6 = tpu.matmul %4, %5, %cst {dimension_numbers = #tpu.dot_dimension_numbers<[1], [0], [0], [1], [0, 0, 1, 1], [], []>} : vector<64x32xbf16>, vector<32x32xbf16>, vector<64x32xf32> -> vector<64x32xf32>
    %c0_5 = arith.constant 0 : index
    %c0_6 = arith.constant 0 : index
    %7 = vector.load %arg3[%c0_5, %c0_6] : memref<64x32xf32, #tpu.memory_space<vmem>>, vector<64x32xf32>
    %8 = arith.addf %6, %7 : vector<64x32xf32>
    %cst_7 = arith.constant 0.000000e+00 : f32
    %9 = vector.broadcast %cst_7 : f32 to vector<64x32xf32>
    %10 = arith.maximumf %8, %9 : vector<64x32xf32>
    %11 = arith.truncf %10 : vector<64x32xf32> to vector<64x32xbf16>
    %c0_8 = arith.constant 0 : index
    %c0_9 = arith.constant 0 : index
    %12 = vector.load %arg6[%c0_8, %c0_9] : memref<32x8xbf16, #tpu.memory_space<vmem>>, vector<32x8xbf16>
    %cst_10 = arith.constant dense<0.000000e+00> : vector<64x8xf32>
    %13 = tpu.matmul %11, %12, %cst_10 {dimension_numbers = #tpu.dot_dimension_numbers<[1], [0], [0], [1], [0, 0, 1, 1], [], []>} : vector<64x32xbf16>, vector<32x8xbf16>, vector<64x8xf32> -> vector<64x8xf32>
    %14 = arith.truncf %13 : vector<64x8xf32> to vector<64x8xbf16>
    %c0_11 = arith.constant 0 : index
    %c0_12 = arith.constant 0 : index
    %c0_13 = arith.constant 0 : index
    %15 = vector.load %arg4[%c0_11, %c0_12, %c0_13] : memref<1x8x256xbf16, #tpu.memory_space<vmem>>, vector<1x8x256xbf16>
    %16 = vector.shape_cast %15 : vector<1x8x256xbf16> to vector<8x256xbf16>
    %cst_14 = arith.constant dense<0.000000e+00> : vector<64x256xf32>
    %17 = tpu.matmul %14, %16, %cst_14 {dimension_numbers = #tpu.dot_dimension_numbers<[1], [0], [0], [1], [0, 0, 1, 1], [], []>} : vector<64x8xbf16>, vector<8x256xbf16>, vector<64x256xf32> -> vector<64x256xf32>
    %cst_15 = arith.constant dense<0xFF800000> : vector<64xf32>
    %18 = vector.multi_reduction <maximumf>, %17, %cst_15 [1] : vector<64x256xf32> to vector<64xf32>
    %19 = vector.shape_cast %18 : vector<64xf32> to vector<64x1xf32>
    %20 = vector.broadcast %19 : vector<64x1xf32> to vector<64x256xf32>
    %21 = arith.subf %17, %20 : vector<64x256xf32>
    %22 = math.exp %21 : vector<64x256xf32>
    %cst_16 = arith.constant dense<0.000000e+00> : vector<64xf32>
    %23 = vector.multi_reduction <add>, %22, %cst_16 [1] : vector<64x256xf32> to vector<64xf32>
    %24 = vector.shape_cast %23 : vector<64xf32> to vector<64x1xf32>
    %25 = tpu.reciprocal %24 {approx = true} : vector<64x1xf32> -> vector<64x1xf32>
    %26 = arith.extf %4 : vector<64x32xbf16> to vector<64x32xf32>
    %27 = vector.broadcast %25 : vector<64x1xf32> to vector<64x32xf32>
    %28 = arith.mulf %26, %27 : vector<64x32xf32>
    %29 = arith.truncf %28 : vector<64x32xf32> to vector<64x32xbf16>
    %c0_17 = arith.constant 0 : index
    %c0_18 = arith.constant 0 : index
    %30 = vector.load %arg8[%c0_17, %c0_18] : memref<32x256xf32, #tpu.memory_space<vmem>>, vector<32x256xf32>
    %31 = arith.truncf %22 : vector<64x256xf32> to vector<64x256xbf16>
    %cst_19 = arith.constant dense<0.000000e+00> : vector<32x256xf32>
    %32 = tpu.matmul %29, %31, %cst_19 {dimension_numbers = #tpu.dot_dimension_numbers<[0], [0], [1], [1], [0, 1, 1, 1], [], []>} : vector<64x32xbf16>, vector<64x256xbf16>, vector<32x256xf32> -> vector<32x256xf32>
    %33 = arith.addf %30, %32 : vector<32x256xf32>
    %c0_20 = arith.constant 0 : index
    %c0_21 = arith.constant 0 : index
    %34 = vector.load %arg8[%c0_20, %c0_21] : memref<32x256xf32, #tpu.memory_space<vmem>>, vector<32x256xf32>
    tpu.vector_store %arg8[%c0_20, %c0_21], %33 {strides = array<i32>} : memref<32x256xf32, #tpu.memory_space<vmem>>, vector<32x256xf32>,
    %c3_i32 = arith.constant 3 : i32
    %35 = arith.cmpi eq, %arg1, %c3_i32 : i32
    %36 = arith.extui %35 : i1 to i32
    %c0_i32_22 = arith.constant 0 : i32
    %37 = arith.cmpi ne, %36, %c0_i32_22 : i32
    scf.if %37 {
      %c0_23 = arith.constant 0 : index
      %c0_24 = arith.constant 0 : index
      %38 = vector.load %arg8[%c0_23, %c0_24] : memref<32x256xf32, #tpu.memory_space<vmem>>, vector<32x256xf32>
      %39 = arith.truncf %38 : vector<32x256xf32> to vector<32x256xbf16>
      %c0_25 = arith.constant 0 : index
      %c0_26 = arith.constant 0 : index
      %c0_27 = arith.constant 0 : index
      %40 = vector.load %arg7[%c0_25, %c0_26, %c0_27] : memref<1x32x256xbf16, #tpu.memory_space<vmem>>, vector<1x32x256xbf16>
      %41 = vector.shape_cast %40 : vector<1x32x256xbf16> to vector<32x256xbf16>
      %42 = vector.shape_cast %39 : vector<32x256xbf16> to vector<1x32x256xbf16>
      tpu.vector_store %arg7[%c0_25, %c0_26, %c0_27], %42 {strides = array<i32>} : memref<1x32x256xbf16, #tpu.memory_space<vmem>>, vector<1x32x256xbf16>,
    } else {
    }
    return
  }
  func.func @transform_0(%arg0: i32, %arg1: i32) -> (i32, i32, i32) {
    %c0_i32 = arith.constant 0 : i32
    %c0_i32_0 = arith.constant 0 : i32
    return %arg0, %arg1, %c0_i32 : i32, i32, i32
  }
  func.func @transform_1(%arg0: i32, %arg1: i32) -> (i32, i32) {
    %c0_i32 = arith.constant 0 : i32
    %c0_i32_0 = arith.constant 0 : i32
    return %arg1, %c0_i32 : i32, i32
  }
  func.func @transform_2(%arg0: i32, %arg1: i32) -> (i32, i32, i32) {
    %c0_i32 = arith.constant 0 : i32
    %c0_i32_0 = arith.constant 0 : i32
    %c0_i32_1 = arith.constant 0 : i32
    return %arg0, %c0_i32, %c0_i32_0 : i32, i32, i32
  }
  func.func @transform_3(%arg0: i32, %arg1: i32) -> (i32, i32) {
    %c0_i32 = arith.constant 0 : i32
    %c0_i32_0 = arith.constant 0 : i32
    %c0_i32_1 = arith.constant 0 : i32
    return %c0_i32, %c0_i32_0 : i32, i32
  }
  func.func @transform_4(%arg0: i32, %arg1: i32) -> (i32, i32) {
    %c0_i32 = arith.constant 0 : i32
    %c0_i32_0 = arith.constant 0 : i32
    %c0_i32_1 = arith.constant 0 : i32
    return %c0_i32, %c0_i32_0 : i32, i32
  }
  func.func @transform_5(%arg0: i32, %arg1: i32) -> (i32, i32, i32) {
    %c0_i32 = arith.constant 0 : i32
    %c0_i32_0 = arith.constant 0 : i32
    %c0_i32_1 = arith.constant 0 : i32
    return %arg0, %c0_i32, %c0_i32_0 : i32, i32, i32
  }
}

</mosaic_0001>

<bundles_post_ra>
// kernel: tpu_custom_call.1
= control target key start
LH: loop header
LB: loop body
LE: loop exit
PB: predicated region body
PF: predicated region fallthrough
CT: control target
= control target key end

     0   :  { %10 = vsyncpa [#allocation4], 0  ;;  %s1635_s0 = inlined_call_operand.vmem [shape: bf16[2,256,32], index: 0, kind: input, shape index: {}]   ;;  %s1636_s1 = inlined_call_operand.vmem [shape: f32[256,32], index: 1, kind: input, shape index: {}]   ;;  %s1637_s2 = inlined_call_operand.vmem [shape: bf16[2,8,256], index: 2, kind: input, shape index: {}]   ;;  %s1638_s3 = inlined_call_operand.vmem [shape: bf16[32,32], index: 3, kind: input, shape index: {}]   ;;  %s1639_s4 = inlined_call_operand.vmem [shape: bf16[32,8], index: 4, kind: input, shape index: {}]   ;;  %s1640_s5 = inlined_call_operand.hbm [shape: bf16[2,32,256], index: 5, kind: output, shape index: {}]  }
   0x1   :  { %12 = vsyncpa [#allocation4 + $0x1], 0  ;;  %s1394_s18 = smov 0   ;;  %s1396_s19 = smov 0  }
   0x2   :  { %s1398_s20 = smov 0   ;;  %s1400_s21 = smov 0  }
   0x3   :  { %s1402_s22 = smov 0   ;;  %s1404_s23 = smov 0  }
   0x4   :  { %s1406_s24 = smov 0   ;;  %s1408_s25 = smov 0  }
   0x5 LB: > { %1646 = sst [smem:[#allocation6_spill]] %s1337_s20  ;;  %s1033_s26 = sadd.s32 4294967295, %s1357_s25   ;;  %s1357_s25 = sphi %s1408_s25, %s18_s25   ;;  %s1353_s24 = sphi %s1406_s24, %s1660_s24   ;;  %s1349_s23 = sphi %s1404_s23, %s1659_s23   ;;  %s1345_s22 = sphi %s1402_s22, %s1658_s22   ;;  %s1341_s21 = sphi %s1400_s21, %s1657_s21   ;;  %s1337_s20 = sphi %s1398_s20, %s1656_s20   ;;  %s1333_s19 = sphi %s1396_s19, %s1662_s19   ;;  %s1329_s18 = sphi %s1394_s18, %s1661_s18  }
   0x6   : > { %1647 = sst [smem:[#allocation7_spill]] %s1349_s23  ;;  %s1034_s27 = sadd.s32 4294967294, %s1357_s25  }
   0x7   : > { %1648 = sst [smem:[#allocation8_spill]] %s1353_s24  ;;  %s27_s28 = sadd.s32 1, %s1349_s23 }
   0x8   : > { %p28_p0 = scmp.ge.s32.totalorder %s27_s28, 4  ;;  %s30_s29 = sadd.s32 1, %s1353_s24 }
   0x9   : > { %p169_p1 = scmp.ne.s32.totalorder %s1337_s20, %s1333_s19  ;;  %p170_p2 = scmp.eq.s32.totalorder %s1033_s26, 7 }
   0xa   : > { %s1664_s28 = smov (%p28_p0, %s27_s28), 0  ;;  %s1666_s29 = smov (!%p28_p0, %s30_s29), %s1353_s24 }
   0xb   : > { %1649 = sst [smem:[#allocation9_spill]] %s1664_s28  ;;  %p1443_p3 = por %p170_p2, %p169_p1 }
   0xc   : > { %p175_p4 = scmp.ne.s32.totalorder %s1333_s19, %s1329_s18  ;;  %p32_p5 = scmp.ge.s32.totalorder %s1666_s29, 2 }
   0xd   : > { %p176_p6 = scmp.eq.s32.totalorder %s1034_s27, 7  ;;  %p1037_p7 = scmp.ge.s32.totalorder %s1357_s25, 1 }
   0xe   : > { %p230_p8 = scmp.lt.s32.totalorder %s1357_s25, 9  ;;  %s1668_s29 = smov (%p32_p5, %s1666_s29), 0 }
   0xf   : > { %1651 = sst [smem:[#allocation10_spill]] %s1668_s29  ;;  %p1453_p9 = por %p176_p6, %p175_p4 }
  0x10   : > { %p231_p10 = pnand %p1037_p7, %p230_p8  ;;  %s156_s7 = ssub.s32 %s1353_s24, %s1668_s29 }
  0x11   : > { %s159_s8 = sadd.s32 1, %s1337_s20  ;;  %p157_p11 = scmp.eq.s32.totalorder %s156_s7, 0 }
  0x12   : > { %234 = sbr.rel (%p231_p10) target bundleno = 1327 (0x52f), region = 40  ;;  %s1644_s10 = sand.u32 (!%p231_p10), 1, %s1333_s19  }
  0x13   : > { %s1461_s9 = scalar_select %p157_p11, %s1337_s20, %s159_s8  }
  0x14   : > { %s1039_s11 = sshll.u32 (!%p231_p10), %s1341_s21, 3  ;;  %s1038_s12 = sshll.u32 (!%p231_p10), %s1644_s10, 5 }
  0x15   : > { %1653 = sst [smem:[#allocation11_spill]] %s1461_s9  ;;  %p273_p12 = scmp.lt.s32.totalorder (!%p231_p10), %s1345_s22, 1 }
  0x16   : > { %p275_p13 = scmp.lt.s32.totalorder (!%p231_p10), %s1039_s11, 31  ;;  %s1482_s20 = scalar_lea.vmem (!%p231_p10), [#allocation3], %s1038_s12 }
  0x17   : > { %s274_s13 = scalar_select %p273_p12, %s1345_s22, 1 }
  0x18   : > { %s1670_s11 = smov (!%p275_p13, %s1039_s11), 31  ;;  %p1046_p0 = scmp.ne.s32.totalorder %s1341_s21, 0 }
  0x19   : > { %s1040_s14 = sshll.u32 %s274_s13, 5  ;;  %s1082_s15 = sshll.u32 %s274_s13, 3 }
  0x1a   : > { %s278_s16 = sadd.s32 %s1040_s14, %s1670_s11  ;;  %s1043_s17 = sshll.u32 %s1670_s11, 3 }
  0x1b   : > { %s1041_s26 = sshll.u32 %s278_s16, 2  ;;  %s1472_s8 = scalar_lea.vmem %s1636_s1, %s1043_s17 }
  0x1c   : > { %s280_s24 = scalar_lea.vmem %s1635_s0, %s1041_s26  ;;  %s1480_s9 = scalar_lea.vmem %s1637_s2, %s1082_s15 }
  0x1d   : > { %297 = sbr.rel (%p1046_p0) target bundleno = 39 (0x27), region = 44 }
  0x22   : > { %v1359_v0 = vmov 0.0  }
  0x23   : > { %298 = vst [vmem:[#allocation2 + $0x30] sm:$0xff] %v1359_v0  ;;  %299 = vst [vmem:[#allocation2] sm:$0xff] %v1359_v0 }
  0x24   : > { %300 = vst [vmem:[#allocation2 + $0x18] sm:$0xff] %v1359_v0  ;;  %301 = vst [vmem:[#allocation2 + $0x10] sm:$0xff] %v1359_v0 }
  0x25   : > { %302 = vst [vmem:[#allocation2 + $0x8] sm:$0xff] %v1359_v0  ;;  %303 = vst [vmem:[#allocation2 + $0x20] sm:$0xff] %v1359_v0 }
  0x26   : > { %304 = vst [vmem:[#allocation2 + $0x28] sm:$0xff] %v1359_v0  ;;  %305 = vst [vmem:[#allocation2 + $0x38] sm:$0xff] %v1359_v0 }
  0x27 PF: > { %v1203_v1 = vld [vmem:[%s1638_s3 + $0x8] sm:$0xff]   ;;  %v1204_v2 = vld [vmem:[%s1638_s3] sm:$0xff]   ;;  %vm358_vm0 = vcmask 261120   ;;  %v1493_v4 = vld [vmem:[%s280_s24 + $0x10] sm:$0xff]   ;;  %vm564_vm1 = vcmask 1043456   ;;  %v1360_v49 = vmov 0  }
  0x28   : > { %1100 = vmatprep.subr.bf16.mxu0 %v1203_v1  ;;  %v1491_v3 = vld [vmem:[%s280_s24] sm:$0xff]   ;;  %1124 = vmatprep.subr.bf16.mxu1 %v1203_v1  ;;  %v1495_v5 = vld [vmem:[%s280_s24 + $0x8] sm:$0xff]   ;;  %v1497_v6 = vld [vmem:[%s280_s24 + $0x18] sm:$0xff]   ;;  %vm551_vm2 = vcmask 64512   ;;  %vm800_vm3 = vcmask 523264   ;;  %p1072_p1 = scmp.ne.s32.totalorder %s1341_s21, 3 }
  0x29   : > { %1101 = vmatpush3.bf16.msra.mxu0 %v1203_v1  ;;  %1126 = vmatpush3.bf16.msra.mxu1 %v1203_v1  ;;  %v1209_v7 = vld [vmem:[%s1639_s4 + $0x8] sm:$0xff]   ;;  %v1210_v8 = vld [vmem:[%s1639_s4] sm:$0xff]   ;;  %v321_v14 = vld [vmem:[%s1472_s8 + $0x18] sm:$0xff] }
  0x2a   : > { %1102 = vmatprep.subr.bf16.mxu0 %v1204_v2  ;;  %1125 = vmatprep.subr.bf16.mxu1 %v1204_v2  ;;  %v322_v11 = vld [vmem:[%s1472_s8 + $0x20] sm:$0xff]  ;;  %v320_v16 = vld [vmem:[%s1472_s8 + $0x10] sm:$0xff]  ;;  %v319_v19 = vld [vmem:[%s1472_s8 + $0x8] sm:$0xff] }
  0x2b   : > { %1104 = vmatprep.mubr.msk.bf16.mxu0 %vm358_vm0, %v1491_v3  ;;  %1108 = vmatprep.mubr.msk.bf16.mxu1 %vm358_vm0, %v1493_v4  ;;  %v318_v13 = vld [vmem:[%s1472_s8] sm:$0xff]  ;;  %v323_v21 = vld [vmem:[%s1472_s8 + $0x28] sm:$0xff]  ;;  %v324_v28 = vld [vmem:[%s1472_s8 + $0x30] sm:$0xff] }
  0x2c   : > { %v325_v30 = vld [vmem:[%s1472_s8 + $0x38] sm:$0xff]  ;;  %v545_v45 = vld [vmem:[%s1480_s9] sm:$0xff] }
  0x2d   : > { %1103 = vmatpush3.bf16.msra.mxu0 %v1204_v2  ;;  %1127 = vmatpush3.bf16.msra.mxu1 %v1204_v2  ;;  %v1064_v46 = vcombine.high %v545_v45, %v545_v45  ;;  %v1063_v47 = vcombine.low %v545_v45, %v545_v45 }
  0x2e   : > { %1112 = vmatprep.subr.bf16.mxu1 %v1209_v7 }
  0x2f   : > { %1065 = vmatprep.subr.msk.bf16.mxu0 %vm564_vm1, %v1064_v46  ;;  %v566_v48 = vsel %vm564_vm1, %v1063_v47, 0 }
  0x30   : > { %1105 = vmatmul.mubr.msk.bf16.vlgmr.msra.gmra.mxu0 %vm358_vm0, %v1495_v5  ;;  %1109 = vmatmul.mubr.msk.bf16.vlgmr.msra.gmra.mxu1 %vm358_vm0, %v1497_v6 }
  0x31   : > { %1113 = vmatpush3.bf16.msra.mxu1 %v1209_v7  ;;  %586 = vmatpush1.bf16.msra.mxu0 %v566_v48 }
  0x32   : > { %1114 = vmatprep.subr.bf16.mxu1 %v1210_v8  ;;  %603 = vmatprep.mubr.bf16.mxu0 %v1360_v49 }
  0x35   : > { %1115 = vmatpush3.bf16.msra.mxu1 %v1210_v8 }
  0xf0   : > { %v1106_v9 = vpop.f32.mrf.mxu0  ;;  %v1110_v10 = vpop.f32.mrf.mxu1 }
  0xf1   : > { %v414_v24 = vadd.f32 %v1106_v9, %v320_v16  ;;  %v430_v37 = vadd.f32 %v1110_v10, %v324_v28 }
  0xf2   : > { %v405_v12 = vpop.f32.mrf.mxu0  ;;  %v421_v15 = vpop.f32.mrf.mxu1 }
  0xf3   : > { %v422_v17 = vadd.f32 %v421_v15, %v322_v11  ;;  %v406_v22 = vadd.f32 %v405_v12, %v318_v13  ;;  %v438_v36 = vmax.f32 %v414_v24, 0.0  ;;  %v442_v42 = vmax.f32 %v430_v37, 0.0 }
  0xf4   : > { %v1107_v18 = vpop.f32.mrf.mxu0  ;;  %v1111_v20 = vpop.f32.mrf.mxu1 }
  0xf5   : > { %v417_v23 = vadd.f32 %v1107_v18, %v321_v14  ;;  %v440_v29 = vmax.f32 %v422_v17, 0.0  ;;  %v436_v33 = vmax.f32 %v406_v22, 0.0  ;;  %v433_v38 = vadd.f32 %v1111_v20, %v325_v30 }
  0xf6   : > { %v408_v25 = vpop.f32.mrf.mxu0  ;;  %v424_v26 = vpop.f32.mrf.mxu1 }
  0xf7   : > { %v409_v27 = vadd.f32 %v408_v25, %v319_v19  ;;  %v425_v31 = vadd.f32 %v424_v26, %v323_v21  ;;  %v439_v32 = vmax.f32 %v417_v23, 0.0  ;;  %v443_v43 = vmax.f32 %v433_v38, 0.0 }
  0xf9   : > { %v437_v34 = vmax.f32 %v409_v27, 0.0  ;;  %v441_v35 = vmax.f32 %v425_v31, 0.0  ;;  %v445_v41 = vpack.c.bf16 %v439_v32, %v438_v36  ;;  %v447_v44 = vpack.c.bf16 %v443_v43, %v442_v42 }
  0xfb   : > { %v444_v39 = vpack.c.bf16 %v437_v34, %v436_v33  ;;  %v446_v40 = vpack.c.bf16 %v441_v35, %v440_v29 }
  0xfd   : > { %1116 = vmatprep.mubr.msk.bf16.mxu1 %vm358_vm0, %v444_v39 }
  0xfe   : > { %1117 = vmatmul.mubr.msk.bf16.vlgmr.msra.gmra.mxu1 %vm358_vm0, %v445_v41 }
  0xff   : > { %1120 = vmatprep.mubr.msk.bf16.mxu1 %vm358_vm0, %v446_v40 }
 0x106   : > { %1121 = vmatmul.mubr.msk.bf16.gmra.mxu1 %vm358_vm0, %v447_v44 }
 0x107   : > { %839 = vmatprep.mubr.bf16.mxu1 %v1360_v49 }
 0x1be   : > { %v1118_v50 = vpop.f32.mrf.mxu1 }
 0x1c0   : > { %v510_v51 = vpop.f32.mrf.mxu1 }
 0x1c2   : > { %v1119_v52 = vpop.f32.mrf.mxu1 }
 0x1c3   : > { %v542_v57 = vpack.c.bf16 %v1119_v52, %v1118_v50 }
 0x1c4   : > { %v513_v53 = vpop.f32.mrf.mxu1 }
 0x1c5   : > { %v541_v54 = vpack.c.bf16 %v513_v53, %v510_v51 }
 0x1c6   : > { %v1122_v55 = vpop.f32.mrf.mxu1 }
 0x1c7   : > { %1066 = vmatmul.mubr.msk.bf16.vlgmr.msra.gmra.mxu0 %vm551_vm2, %v541_v54 }
 0x1c8   : > { %613 = vmatprep.mubr.bf16.mxu0 %v1360_v49  ;;  %v526_v56 = vpop.f32.mrf.mxu1 }
 0x1ca   : > { %v1123_v58 = vpop.f32.mrf.mxu1 }
 0x1cb   : > { %v544_v61 = vpack.c.bf16 %v1123_v58, %v1122_v55 }
 0x1cc   : > { %v529_v59 = vpop.f32.mrf.mxu1 }
 0x1cd   : > { %v543_v60 = vpack.c.bf16 %v529_v59, %v526_v56 }
 0x1cf   : > { %1067 = vmatmul.mubr.msk.bf16.gmra.mxu0 %vm551_vm2, %v542_v57 }
 0x1d0   : > { %623 = vmatprep.mubr.bf16.mxu0 %v1360_v49 }
 0x1d7   : > { %1068 = vmatmul.mubr.msk.bf16.gmra.mxu0 %vm551_vm2, %v543_v60 }
 0x1d8   : > { %633 = vmatprep.mubr.bf16.mxu0 %v1360_v49 }
 0x1df   : > { %1069 = vmatmul.mubr.msk.bf16.gmra.mxu0 %vm551_vm2, %v544_v61 }
 0x287   : > { %v605_v62 = vpop.f32.mrf.mxu0 }
 0x289   : > { %v607_v63 = vpop.f32.mrf.mxu0 }
 0x28a   : > { %v644_v0 = vmax.f32 %v605_v62, %v607_v63 }
 0x28b   : > { %v609_v1 = vpop.f32.mrf.mxu0 }
 0x28c   : > { %645 = vmax.xlane.f32.xlu0 %v644_v0 }
 0x28d   : > { %v611_v2 = vpop.f32.mrf.mxu0 }
 0x28e   : > { %v647_v7 = vmax.f32 %v609_v1, %v611_v2 }
 0x28f   : > { %v615_v8 = vpop.f32.mrf.mxu0 }
 0x290   : > { %648 = vmax.xlane.f32.xlu0 %v647_v7 }
 0x291   : > { %v617_v9 = vpop.f32.mrf.mxu0 }
 0x292   : > { %v650_v10 = vmax.f32 %v615_v8, %v617_v9 }
 0x293   : > { %v619_v11 = vpop.f32.mrf.mxu0 }
 0x294   : > { %651 = vmax.xlane.f32.xlu1 %v650_v10 }
 0x295   : > { %v621_v12 = vpop.f32.mrf.mxu0 }
 0x296   : > { %v653_v13 = vmax.f32 %v619_v11, %v621_v12 }
 0x297   : > { %v625_v14 = vpop.f32.mrf.mxu0 }
 0x298   : > { %654 = vmax.xlane.f32.xlu1 %v653_v13 }
 0x299   : > { %v627_v15 = vpop.f32.mrf.mxu0 }
 0x29a   : > { %v656_v16 = vmax.f32 %v625_v14, %v627_v15 }
 0x29b   : > { %v629_v17 = vpop.f32.mrf.mxu0 }
 0x29c   : > { %657 = vmax.xlane.f32.xlu0 %v656_v16 }
 0x29d   : > { %v631_v18 = vpop.f32.mrf.mxu0 }
 0x29e   : > { %v659_v19 = vmax.f32 %v629_v17, %v631_v18 }
 0x29f   : > { %v1531_v20 = vpop.f32.mrf.mxu0 }
 0x2a0   : > { %660 = vmax.xlane.f32.xlu1 %v659_v19 }
 0x2a1   : > { %v1533_v21 = vpop.f32.mrf.mxu0 }
 0x2a2   : > { %v662_v22 = vmax.f32 %v1531_v20, %v1533_v21 }
 0x2a3   : > { %v1537_v23 = vpop.f32.mrf.mxu0 }
 0x2a4   : > { %663 = vmax.xlane.f32.xlu0 %v662_v22 }
 0x2a5   : > { %v1539_v24 = vpop.f32.mrf.mxu0 }
 0x2a6   : > { %v665_v25 = vmax.f32 %v1537_v23, %v1539_v24 }
 0x2a8   : > { %666 = vmax.xlane.f32.xlu1 %v665_v25 }
 0x315   : > { %v646_v26 = vpop.xlane.xlu0 %645 }
 0x316   : > { %v668_v27 = vsub.f32 %v605_v62, %v646_v26  ;;  %v669_v28 = vsub.f32 %v607_v63, %v646_v26 }
 0x318   : > { %v684_v29 = vmul.f32 1.442695, %v668_v27  ;;  %v686_v30 = vmul.f32 1.442695, %v669_v28 }
 0x319   : > { %v649_v31 = vpop.xlane.xlu0 %648 }
 0x31a   : > { %1217 = vpow2.f32 %v684_v29  ;;  %v670_v32 = vsub.f32 %v609_v1, %v649_v31  ;;  %v671_v33 = vsub.f32 %v611_v2, %v649_v31 }
 0x31b   : > { %1219 = vpow2.f32 %v686_v30 }
 0x31c   : > { %v688_v34 = vmul.f32 1.442695, %v670_v32  ;;  %v690_v35 = vmul.f32 1.442695, %v671_v33 }
 0x31d   : > { %v652_v36 = vpop.xlane.xlu1 %651 }
 0x31e   : > { %1221 = vpow2.f32 %v688_v34  ;;  %v672_v37 = vsub.f32 %v615_v8, %v652_v36  ;;  %v673_v38 = vsub.f32 %v617_v9, %v652_v36 }
 0x31f   : > { %1223 = vpow2.f32 %v690_v35 }
 0x320   : > { %v692_v39 = vmul.f32 1.442695, %v672_v37  ;;  %v694_v40 = vmul.f32 1.442695, %v673_v38 }
 0x321   : > { %v655_v41 = vpop.xlane.xlu1 %654 }
 0x322   : > { %1225 = vpow2.f32 %v692_v39  ;;  %v674_v42 = vsub.f32 %v619_v11, %v655_v41  ;;  %v675_v43 = vsub.f32 %v621_v12, %v655_v41 }
 0x323   : > { %1227 = vpow2.f32 %v694_v40 }
 0x324   : > { %v696_v44 = vmul.f32 1.442695, %v674_v42  ;;  %v698_v45 = vmul.f32 1.442695, %v675_v43  ;;  %v748_v43 = vunpack.c.l.bf16 %v1491_v3 }
 0x325   : > { %v658_v46 = vpop.xlane.xlu0 %657 }
 0x326   : > { %1229 = vpow2.f32 %v696_v44  ;;  %v676_v47 = vsub.f32 %v625_v14, %v658_v46  ;;  %v677_v48 = vsub.f32 %v627_v15, %v658_v46  ;;  %v749_v44 = vunpack.c.h.bf16 %v1491_v3 }
 0x327   : > { %v1543_v50 = vpop.eup %1217  ;;  %1231 = vpow2.f32 %v698_v45 }
 0x328   : > { %v1545_v51 = vpop.eup %1219  ;;  %v700_v52 = vmul.f32 1.442695, %v676_v47  ;;  %v702_v53 = vmul.f32 1.442695, %v677_v48 }
 0x329   : > { %v661_v54 = vpop.xlane.xlu1 %660  ;;  %v716_v55 = vadd.f32 %v1545_v51, %v1543_v50 }
 0x32a   : > { %1233 = vpow2.f32 %v700_v52  ;;  %v678_v56 = vsub.f32 %v629_v17, %v661_v54  ;;  %v679_v57 = vsub.f32 %v631_v18, %v661_v54  ;;  %v751_v54 = vunpack.c.h.bf16 %v1495_v5 }
 0x32b   : > { %v1549_v58 = vpop.eup %1221  ;;  %1235 = vpow2.f32 %v702_v53  ;;  %717 = vadd.xlane.f32.xlu0 %v716_v55  ;;  %v750_v53 = vunpack.c.l.bf16 %v1495_v5  ;;  %v754_v5 = vunpack.c.l.bf16 %v1497_v6 }
 0x32c   : > { %v1224_v59 = vpop.eup %1223  ;;  %v704_v60 = vmul.f32 1.442695, %v678_v56  ;;  %v706_v61 = vmul.f32 1.442695, %v679_v57  ;;  %v776_v38 = vpack.c.bf16 %v1549_v58, %v1543_v50 }
 0x32d   : > { %v664_v62 = vpop.xlane.xlu0 %663  ;;  %v719_v63 = vadd.f32 %v1224_v59, %v1549_v58  ;;  %v777_v37 = vpack.c.bf16 %v1224_v59, %v1545_v51 }
 0x32e   : > { %1237 = vpow2.f32 %v704_v60  ;;  %v680_v0 = vsub.f32 %v1531_v20, %v664_v62  ;;  %v681_v1 = vsub.f32 %v1533_v21, %v664_v62  ;;  %v753_v62 = vunpack.c.h.bf16 %v1493_v4 }
 0x32f   : > { %v1226_v2 = vpop.eup %1225  ;;  %1239 = vpow2.f32 %v706_v61  ;;  %720 = vadd.xlane.f32.xlu1 %v719_v63  ;;  %v752_v61 = vunpack.c.l.bf16 %v1493_v4 }
 0x330   : > { %v1228_v7 = vpop.eup %1227  ;;  %v708_v8 = vmul.f32 1.442695, %v680_v0  ;;  %v710_v9 = vmul.f32 1.442695, %v681_v1 }
 0x331   : > { %v667_v10 = vpop.xlane.xlu1 %666  ;;  %v722_v11 = vadd.f32 %v1228_v7, %v1226_v2 }
 0x332   : > { %1241 = vpow2.f32 %v708_v8  ;;  %v682_v12 = vsub.f32 %v1537_v23, %v667_v10  ;;  %v683_v13 = vsub.f32 %v1539_v24, %v667_v10  ;;  %v755_v8 = vunpack.c.h.bf16 %v1497_v6 }
 0x333   : > { %v1230_v14 = vpop.eup %1229  ;;  %1243 = vpow2.f32 %v710_v9  ;;  %723 = vadd.xlane.f32.xlu0 %v722_v11 }
 0x334   : > { %v1232_v15 = vpop.eup %1231  ;;  %v712_v16 = vmul.f32 1.442695, %v682_v12  ;;  %v714_v17 = vmul.f32 1.442695, %v683_v13  ;;  %v778_v36 = vpack.c.bf16 %v1230_v14, %v1226_v2 }
 0x335   : > { %v725_v18 = vadd.f32 %v1232_v15, %v1230_v14  ;;  %v779_v35 = vpack.c.bf16 %v1232_v15, %v1228_v7  ;;  %v768_v15 = vld [vmem:[#allocation2 + $0x30] sm:$0xff] }
 0x336   : > { %1245 = vpow2.f32 %v712_v16 }
 0x337   : > { %v1234_v19 = vpop.eup %1233  ;;  %1247 = vpow2.f32 %v714_v17  ;;  %726 = vadd.xlane.f32.xlu1 %v725_v18  ;;  %v769_v17 = vld [vmem:[#allocation2] sm:$0xff] }
 0x338   : > { %v1236_v20 = vpop.eup %1235 }
 0x339   : > { %v728_v21 = vadd.f32 %v1236_v20, %v1234_v19 }
 0x33b   : > { %v1238_v22 = vpop.eup %1237  ;;  %729 = vadd.xlane.f32.xlu0 %v728_v21 }
 0x33c   : > { %v1240_v25 = vpop.eup %1239  ;;  %v780_v34 = vpack.c.bf16 %v1238_v22, %v1234_v19 }
 0x33d   : > { %v731_v26 = vadd.f32 %v1240_v25, %v1238_v22  ;;  %v781_v33 = vpack.c.bf16 %v1240_v25, %v1236_v20  ;;  %v770_v20 = vld [vmem:[#allocation2 + $0x18] sm:$0xff]  ;;  %v771_v22 = vld [vmem:[#allocation2 + $0x10] sm:$0xff] }
 0x33f   : > { %v1242_v23 = vpop.eup %1241  ;;  %732 = vadd.xlane.f32.xlu1 %v731_v26 }
 0x340   : > { %v1244_v24 = vpop.eup %1243 }
 0x341   : > { %v734_v27 = vadd.f32 %v1244_v24, %v1242_v23 }
 0x343   : > { %v1246_v28 = vpop.eup %1245  ;;  %735 = vadd.xlane.f32.xlu0 %v734_v27 }
 0x344   : > { %v1248_v29 = vpop.eup %1247  ;;  %v782_v30 = vpack.c.bf16 %v1246_v28, %v1242_v23  ;;  %v772_v23 = vld [vmem:[#allocation2 + $0x8] sm:$0xff] }
 0x345   : > { %v783_v31 = vpack.c.bf16 %v1248_v29, %v1244_v24  ;;  %v737_v32 = vadd.f32 %v1248_v29, %v1246_v28 }
 0x347   : > { %815 = vmatprep.subr.bf16.mxu1 %v783_v31  ;;  %738 = vadd.xlane.f32.xlu1 %v737_v32 }
 0x348   : > { %816 = vmatpush1.bf16.msra.mxu1 %v782_v30  ;;  %v774_v30 = vld [vmem:[#allocation2 + $0x28] sm:$0xff] }
 0x349   : > { %817 = vmatprep.subr.bf16.mxu1 %v781_v33  ;;  %v775_v33 = vld [vmem:[#allocation2 + $0x38] sm:$0xff] }
 0x34c   : > { %818 = vmatpush1.bf16.msra.mxu1 %v780_v34 }
 0x34d   : > { %819 = vmatprep.subr.bf16.mxu1 %v779_v35 }
 0x350   : > { %820 = vmatpush1.bf16.msra.mxu1 %v778_v36 }
 0x351   : > { %821 = vmatprep.subr.bf16.mxu1 %v777_v37 }
 0x354   : > { %822 = vmatpush1.bf16.msra.mxu1 %v776_v38 }
 0x3b4   : > { %v718_v39 = vpop.xlane.xlu0 %717 }
 0x3b5   : > { %1249 = vrcp.f32 %v718_v39 }
 0x3b8   : > { %v721_v40 = vpop.xlane.xlu1 %720 }
 0x3b9   : > { %1251 = vrcp.f32 %v721_v40 }
 0x3bc   : > { %v724_v41 = vpop.xlane.xlu0 %723 }
 0x3bd   : > { %1253 = vrcp.f32 %v724_v41 }
 0x3c0   : > { %v727_v42 = vpop.xlane.xlu1 %726 }
 0x3c1   : > { %1255 = vrcp.f32 %v727_v42 }
 0x3c2   : > { %v1250_v45 = vpop.eup %1249 }
 0x3c3   : > { %v756_v48 = vmul.f32 %v1250_v45, %v748_v43 }
 0x3c4   : > { %v730_v46 = vpop.xlane.xlu0 %729 }
 0x3c5   : > { %1257 = vrcp.f32 %v730_v46 }
 0x3c6   : > { %v1252_v47 = vpop.eup %1251 }
 0x3c7   : > { %v757_v51 = vmul.f32 %v1252_v47, %v749_v44 }
 0x3c8   : > { %v733_v50 = vpop.xlane.xlu1 %732 }
 0x3c9   : > { %1259 = vrcp.f32 %v733_v50  ;;  %v764_v52 = vpack.c.bf16 %v757_v51, %v756_v48 }
 0x3ca   : > { %v1254_v55 = vpop.eup %1253 }
 0x3cb   : > { %784 = vxpose.xlu0.c.b16.start [1/4] (short) (narrow) %v764_v52, 32  ;;  %v758_v58 = vmul.f32 %v1254_v55, %v750_v53 }
 0x3cc   : > { %v736_v56 = vpop.xlane.xlu0 %735 }
 0x3cd   : > { %1261 = vrcp.f32 %v736_v56 }
 0x3ce   : > { %v1256_v57 = vpop.eup %1255 }
 0x3cf   : > { %v759_v3 = vmul.f32 %v1256_v57, %v751_v54 }
 0x3d0   : > { %v739_v59 = vpop.xlane.xlu1 %738 }
 0x3d1   : > { %1263 = vrcp.f32 %v739_v59  ;;  %v765_v60 = vpack.c.bf16 %v759_v3, %v758_v58 }
 0x3d2   : > { %v1258_v63 = vpop.eup %1257 }
 0x3d3   : > { %785 = vxpose.xlu0.c.b16.cont [2/4] (short) (narrow) %v765_v60, 32  ;;  %v760_v1 = vmul.f32 %v1258_v63, %v752_v61 }
 0x3d6   : > { %v1260_v0 = vpop.eup %1259 }
 0x3d7   : > { %v761_v2 = vmul.f32 %v1260_v0, %v753_v62 }
 0x3d9   : > { %v766_v7 = vpack.c.bf16 %v761_v2, %v760_v1 }
 0x3da   : > { %v1262_v9 = vpop.eup %1261 }
 0x3db   : > { %786 = vxpose.xlu0.c.b16.cont [3/4] (short) (narrow) %v766_v7, 32  ;;  %v762_v11 = vmul.f32 %v1262_v9, %v754_v5 }
 0x3de   : > { %v1264_v10 = vpop.eup %1263 }
 0x3df   : > { %v763_v12 = vmul.f32 %v1264_v10, %v755_v8 }
 0x3e1   : > { %v767_v13 = vpack.c.bf16 %v763_v12, %v762_v11 }
 0x3e3   : > { %787 = vxpose.xlu0.c.b16.end [4/4] (short) (narrow) %v767_v13, 32 }
 0x439   : > { %v792_v14 = vpop.trf.xlu0 }
 0x43a   : > { %1070 = vmatmul.mubr.msk.bf16.vlgmr.msra.gmra.mxu1 %vm800_vm3, %v792_v14 }
 0x43b   : > { %849 = vmatprep.mubr.bf16.mxu1 %v1360_v49  ;;  %v773_v49 = vld [vmem:[#allocation2 + $0x20] sm:$0xff] }
 0x43d   : > { %v793_v4 = vpop.trf.xlu0 }
 0x442   : > { %1071 = vmatmul.mubr.msk.bf16.gmra.mxu1 %vm800_vm3, %v793_v4 }
 0x4fa   : > { %v841_v16 = vpop.f32.mrf.mxu1 }
 0x4fb   : > { %v860_v18 = vadd.f32 %v841_v16, %v768_v15 }
 0x4fc   : > { %v843_v19 = vpop.f32.mrf.mxu1 }
 0x4fd   : > { %868 = vst [vmem:[#allocation2 + $0x30] sm:$0xff] %v860_v18  ;;  %v861_v6 = vadd.f32 %v843_v19, %v769_v17 }
 0x4fe   : > { %v845_v21 = vpop.f32.mrf.mxu1 }
 0x4ff   : > { %869 = vst [vmem:[#allocation2] sm:$0xff] %v861_v6  ;;  %v862_v25 = vadd.f32 %v845_v21, %v770_v20 }
 0x500   : > { %v847_v26 = vpop.f32.mrf.mxu1 }
 0x501   : > { %870 = vst [vmem:[#allocation2 + $0x18] sm:$0xff] %v862_v25  ;;  %v863_v24 = vadd.f32 %v847_v26, %v771_v22 }
 0x502   : > { %v851_v27 = vpop.f32.mrf.mxu1 }
 0x503   : > { %871 = vst [vmem:[#allocation2 + $0x10] sm:$0xff] %v863_v24  ;;  %v864_v28 = vadd.f32 %v851_v27, %v772_v23 }
 0x504   : > { %v853_v29 = vpop.f32.mrf.mxu1 }
 0x505   : > { %872 = vst [vmem:[#allocation2 + $0x8] sm:$0xff] %v864_v28  ;;  %v865_v31 = vadd.f32 %v853_v29, %v773_v49 }
 0x506   : > { %v855_v32 = vpop.f32.mrf.mxu1 }
 0x507   : > { %873 = vst [vmem:[#allocation2 + $0x20] sm:$0xff] %v865_v31  ;;  %v866_v34 = vadd.f32 %v855_v32, %v774_v30  ;;  %879 = sbr.rel (%p1072_p1) target bundleno = 1302 (0x516), region = 48 }
 0x508   : > { %v857_v35 = vpop.f32.mrf.mxu1 }
 0x509   : > { %874 = vst [vmem:[#allocation2 + $0x28] sm:$0xff] %v866_v34  ;;  %v867_v36 = vadd.f32 %v857_v35, %v775_v33 }
 0x50b   : > { %875 = vst [vmem:[#allocation2 + $0x38] sm:$0xff] %v867_v36 }
 0x50c   : > { %v880_v37 = vld [vmem:[#allocation2 + $0x30] sm:$0xff]  ;;  %v881_v38 = vld [vmem:[#allocation2] sm:$0xff]  ;;  %v882_v39 = vld [vmem:[#allocation2 + $0x18] sm:$0xff] }
 0x50d   : > { %v1083_v40 = vpack.c.bf16 %v881_v38, %v880_v37  ;;  %v883_v41 = vld [vmem:[#allocation2 + $0x10] sm:$0xff]  ;;  %v884_v42 = vld [vmem:[#allocation2 + $0x8] sm:$0xff] }
 0x50e   : > { %v885_v43 = vld [vmem:[#allocation2 + $0x20] sm:$0xff]  ;;  %v1084_v44 = vpack.c.bf16 %v883_v41, %v882_v39 }
 0x50f   : > { %v1085_v45 = vpack.c.bf16 %v885_v43, %v884_v42  ;;  %912 = vst [vmem:[%s1482_s20] sm:$0xff] %v1083_v40 }
 0x510   : > { %v886_v46 = vld [vmem:[#allocation2 + $0x28] sm:$0xff]  ;;  %913 = vst [vmem:[%s1482_s20 + $0x8] sm:$0xff] %v1084_v44 }
 0x511   : > { %914 = vst [vmem:[%s1482_s20 + $0x10] sm:$0xff] %v1085_v45 }
 0x512   : > { %v887_v47 = vld [vmem:[#allocation2 + $0x38] sm:$0xff] }
 0x513   : > { %v1086_v48 = vpack.c.bf16 %v887_v47, %v886_v46 }
 0x515   : > { %915 = vst [vmem:[%s1482_s20 + $0x18] sm:$0xff] %v1086_v48 }
 0x516 PF: > { %s1087_s21 = sshll.u32 %s1345_s22, 9  ;;  %s930_s16 = sshll.u32 %s1482_s20, 4  ;;  %s1580_s16 = int_to_ptr.vmem [resolvable:$true] %s930_s16 }
 0x517   : > { %s1577_s15 = scalar_lea.hbm %s1640_s5, %s1087_s21  ;;  %s1654_s17 = sand.u32 1, %s1333_s19  }
 0x518   : > { %s1584_s26 = scalar_lea.sflag [#allocation4], %s1654_s17  ;;  %s1265_s27 = scalar_lea.vmem %s1580_s16, 512 }
 0x519   : > { %p1266_p2 = scmp.ne.s32.totalorder %s1580_s16, %s1265_s27  ;;  %s1361_s22 = smov [#allocation3]  }
 0x51a   : > { %s1269_s7 = sshll.u32 %s1361_s22, 4  ;;  %s1270_s7 = int_to_ptr.vmem [resolvable:$false] %s1269_s7 }
 0x51b   : > { %p1267_p4 = pnand %p1266_p2, %p1443_p3  ;;  %s1271_s8 = scalar_lea.vmem %s1270_s7, 1024 }
 0x51c   : > { %p1272_p6 = scmp.lt.s32.totalorder %s1580_s16, %s1270_s7  ;;  %p1273_p7 = scmp.lt.s32.totalorder %s1271_s8, %s1265_s27 }
 0x51d   : > { %p1268_p5 = pneg %p1267_p4 }
 0x51e   : > { %p1274_p8 = por %p1273_p7, %p1272_p6 }
 0x520   : > { %p1275_p10 = pnand %p1274_p8, %p1268_p5 }
 0x522   : > { %1278 = shalt.err (!%p1275_p10)
}
 0x523   : > { %s1279_s20 = scalar_lea.hbm %s1577_s15, 512  ;;  %s1283_s23 = scalar_lea.hbm %s1640_s5, 1024 }
 0x524   : > { %p1280_p11 = scmp.ne.s32.totalorder %s1577_s15, %s1279_s20  ;;  %p1284_p0 = scmp.lt.s32.totalorder %s1577_s15, %s1640_s5 }
 0x525   : > { %p1285_p1 = scmp.lt.s32.totalorder %s1283_s23, %s1279_s20 }
 0x526   : > { %p1281_p12 = pnand %p1280_p11, %p1443_p3 }
 0x527   : > { %p1286_p2 = por %p1285_p1, %p1284_p0 }
 0x528   : > { %p1282_p13 = pneg %p1281_p12 }
 0x52a   : > { %p1287_p4 = pnand %p1286_p2, %p1282_p13 }
 0x52c   : > { %1290 = shalt.err (!%p1287_p4)
}
 0x52d   : > { %s1362_s11 = smov 128   ;;  %s1363_s12 = smov 8  }
 0x52e   : > { %1128 = dma.vmem_to_hbm [thread:$0]  (%p1443_p3), %s1580_s16, 512, %s1577_s15, %s1584_s26, %s1362_s11, %s1362_s11, %s1363_s12  }
 0x52f PF: > { %p1134_p5 = scmp.ge.s32.totalorder %s1357_s25, 2  ;;  %s945_s13 = sand.u32 1, %s1329_s18  }
 0x530   : > { %s946_s21 = scalar_lea.sflag [#allocation4], %s945_s13 }
 0x531   : > { %p1131_p6 = pnand %p1134_p5, %p1453_p9 }
 0x533   : > { %p1132_p7 = pneg %p1131_p6 }
 0x535   : > { %1324 = dma.done.wait (%p1132_p7), %s946_s21, 512  }
 0x536   : > { %1326 = vsyncadd (%p1132_p7), %s946_s21, 4294966784  ;;  %s18_s25 = sadd.s32 1, %s1357_s25   ;;  %s1655_s9 = sld [smem:[#allocation6_spill]] }
 0x537   : > { %p15_p8 = scmp.ge.s32.totalorder %s18_s25, 10   ;;  %s1656_s20 = sld [smem:[#allocation11_spill]] }
 0x538   : > { %s1657_s21 = sld [smem:[#allocation7_spill]]  ;;  %s1661_s18 = smov %s1333_s19 }
 0x539   : > { %s1658_s22 = sld [smem:[#allocation8_spill]]  ;;  %17 = sbr.rel (!%p15_p8) target bundleno = 5 (0x5), region = 89 }
 0x53a   : > { %s1659_s23 = sld [smem:[#allocation9_spill]] }
 0x53b   : > { %s1660_s24 = sld [smem:[#allocation10_spill]] }
 0x53c   : > { %s1662_s19 = smov %s1655_s9 }
 0x53e   :  { %951 = vsyncpa [#allocation4], 1 }
 0x53f   :  { %953 = vsyncpa [#allocation4 + $0x1], 1 }

</bundles_post_ra>
